<compile_context>
chip_gen: v6e
topology: v6e:2x2x1
jax: 0.10.0
libtpu: 0.0.40
codegen_flags: <defaults>
</compile_context>

<pallas_src>
import functools

import jax
import jax.numpy as jnp
from jax.experimental import pallas as pl
from jax.experimental.pallas import tpu as pltpu

_NEG_BIG = -1e30  # finite "-inf" for masking (avoids inf-inf NaN paths)


def _round_up(x, m):
    return (x + m - 1) // m * m


def _pick_head_group(heads, dh, lane_budget=512):
    """Largest divisor G of `heads` with G*dh <= lane_budget (lane-dense output)."""
    best = 1
    for g in range(1, heads + 1):
        if heads % g == 0 and g * dh <= max(lane_budget, dh):
            best = g
    return best


# ------------------- row-tiled Linear (bf16 MXU operands, f32 accumulation) -------------------

def _linear_kernel(x_ref, w_ref, o_ref):
    acc = jnp.dot(x_ref[...].astype(jnp.bfloat16), w_ref[...].astype(jnp.bfloat16),
                  preferred_element_type=jnp.float32)
    o_ref[...] = acc.astype(o_ref.dtype)


def _linear_bias_kernel(x_ref, w_ref, b_ref, o_ref):
    acc = jnp.dot(x_ref[...].astype(jnp.bfloat16), w_ref[...].astype(jnp.bfloat16),
                  preferred_element_type=jnp.float32)
    acc = acc + b_ref[...].astype(jnp.float32)
    o_ref[...] = acc.astype(o_ref.dtype)


def linear_pallas(x2d, w, b=None, *, out_dtype=None, tile_r=512):
    """x2d: (R, Din) @ w: (Din, Dout) [+ b: (Dout,)], rows tiled + pipelined.

    Weight stays VMEM-resident (constant index_map). Fine for the dims in this
    model; TODO(synk): add a Dout/K tiling axis for very large weights (v7x VMEM).
    """
    R, Din = x2d.shape
    Dout = w.shape[1]
    out_dtype = out_dtype or x2d.dtype
    tile = min(tile_r, _round_up(R, 8))
    Rp = _round_up(R, tile)
    xp = jnp.pad(x2d, ((0, Rp - R), (0, 0))) if Rp != R else x2d

    in_specs = [
        pl.BlockSpec((tile, Din), lambda i: (i, 0)),
        pl.BlockSpec((Din, Dout), lambda i: (0, 0)),   # weight resident in VMEM
    ]
    args = [xp, w]
    if b is not None:
        in_specs.append(pl.BlockSpec((1, Dout), lambda i: (0, 0)))
        args.append(b.reshape(1, Dout))
        kernel = _linear_bias_kernel
    else:
        kernel = _linear_kernel

    out = pl.pallas_call(
        kernel,
        out_shape=jax.ShapeDtypeStruct((Rp, Dout), out_dtype),
        grid_spec=pltpu.PrefetchScalarGridSpec(
            num_scalar_prefetch=0,
            grid=(Rp // tile,),
            in_specs=in_specs,
            out_specs=pl.BlockSpec((tile, Dout), lambda i: (i, 0)),
        ),
        compiler_params=pltpu.CompilerParams(
            dimension_semantics=("parallel",)),
    )(*args)
    return out[:R] if Rp != R else out


# ---------------------------- fused flash-attention kernel ----------------------------

def _attn_kernel(q_ref, k_ref, v_ref, o_ref, m_scr, l_scr, acc_scr,
                 *, n_real, tkv, mask_keys):
    # Grid: (batch*head_group, q_tile, kv_tile). kv MUST stay the last
    # (sequential, "arbitrary") axis: the scratch accumulators persist across it.
    kv = pl.program_id(2)

    @pl.when(kv == 0)
    def _():
        m_scr[...] = jnp.full_like(m_scr, _NEG_BIG)
        l_scr[...] = jnp.zeros_like(l_scr)
        acc_scr[...] = jnp.zeros_like(acc_scr)

    q = q_ref[...]                       # (G, tq, dh) bf16 (scale pre-folded into W_q)
    k = k_ref[...]                       # (G, tkv, dh) bf16
    # scores: bf16 MXU operands, f32 accumulation
    s = jnp.einsum('gqd,gkd->gqk', q, k, preferred_element_type=jnp.float32)

    if mask_keys:  # static: only traced when the KV axis was padded
        col = kv * tkv + jax.lax.broadcasted_iota(jnp.int32, s.shape, 2)
        s = jnp.where(col < n_real, s, _NEG_BIG)

    m_prev = m_scr[...]                                        # (G, tq, 1)
    m_new = jnp.maximum(m_prev, jnp.max(s, axis=-1, keepdims=True))
    alpha = jnp.exp(m_prev - m_new)
    p = jnp.exp(s - m_new)                                     # (G, tq, tkv) f32
    l_scr[...] = alpha * l_scr[...] + jnp.sum(p, axis=-1, keepdims=True)
    acc_scr[...] = alpha * acc_scr[...] + jnp.einsum(
        'gqk,gkd->gqd', p.astype(v_ref.dtype), v_ref[...],
        preferred_element_type=jnp.float32)
    m_scr[...] = m_new

    @pl.when(kv == pl.num_programs(2) - 1)
    def _():
        out = acc_scr[...] * pl.reciprocal(l_scr[...], approx=True)   # (G, tq, dh) f32
        g_heads = out.shape[0]
        # Merge the head group lane-dense: (G, tq, dh) -> (tq, G*dh), i.e. the
        # '(h d)' layout the output projection consumes. Single wide store.
        o_ref[0] = jnp.concatenate(
            [out[g].astype(o_ref.dtype) for g in range(g_heads)], axis=-1)


def flash_attention_pallas(q, k, v, *, batch, heads):
    """q, k, v: (B*H, N, dh) -> (B, N, H*dh) in the merged 'b n (h d)' layout."""
    BH, N, dh = q.shape
    assert BH == batch * heads
    G = _pick_head_group(heads, dh)      # heads processed per grid step
    hg_per_b = heads // G
    inner = heads * dh

    # Sequence tile (shared by the q and kv axes).
    t = 256 if N >= 256 else _round_up(N, 8)
    n_pad = _round_up(N, t)
    if n_pad != N:
        pad = ((0, 0), (0, n_pad - N), (0, 0))
        q, k, v = jnp.pad(q, pad), jnp.pad(k, pad), jnp.pad(v, pad)
    n_seq = n_pad // t

    kernel = functools.partial(_attn_kernel, n_real=N, tkv=t,
                               mask_keys=(n_pad != N))
    out = pl.pallas_call(
        kernel,
        out_shape=jax.ShapeDtypeStruct((batch, n_pad, inner), q.dtype),
        grid_spec=pltpu.PrefetchScalarGridSpec(
            num_scalar_prefetch=0,
            grid=(batch * hg_per_b, n_seq, n_seq),
            in_specs=[
                pl.BlockSpec((G, t, dh), lambda g, qi, kv: (g, qi, 0)),   # Q tile
                pl.BlockSpec((G, t, dh), lambda g, qi, kv: (g, kv, 0)),   # K tile
                pl.BlockSpec((G, t, dh), lambda g, qi, kv: (g, kv, 0)),   # V tile
            ],
            out_specs=pl.BlockSpec(
                (1, t, G * dh),
                lambda g, qi, kv: (g // hg_per_b, qi, g % hg_per_b)),
            scratch_shapes=[
                pltpu.VMEM((G, t, 1), jnp.float32),    # running max m
                pltpu.VMEM((G, t, 1), jnp.float32),    # running sum l
                pltpu.VMEM((G, t, dh), jnp.float32),   # output accumulator
            ],
        ),
        compiler_params=pltpu.CompilerParams(
            dimension_semantics=("parallel", "parallel", "arbitrary")),
    )(q, k, v)
    return out[:, :N, :] if n_pad != N else out


# --------------------------------- Attention module ---------------------------------

class AttentionPallas:
    """Mirrors the PyTorch Attention forward pass (bf16 MXU path, f32 softmax)."""

    def __init__(self, dim, heads=8, dim_head=64, dropout=0.0, *, key):
        inner_dim = dim_head * heads
        self.heads = heads
        self.dim_head = dim_head
        self.scale = dim_head ** (-0.5)
        self.project_out = not (heads == 1 and dim_head == dim)

        k1, k2, k3 = jax.random.split(key, 3)
        # nn.Linear default init range, stored as (in, out) so y = x @ W, bf16 params.
        bq = 1.0 / (dim ** 0.5)
        self.w_qkv = jax.random.uniform(
            k1, (dim, inner_dim * 3), jnp.float32, -bq, bq).astype(jnp.bfloat16)
        # Fold the softmax scale into the q columns (exact for dh=64 -> scale=1/8).
        fold = jnp.concatenate([jnp.full((inner_dim,), self.scale, jnp.float32),
                                jnp.ones((2 * inner_dim,), jnp.float32)])
        self.w_qkv_scaled = (self.w_qkv.astype(jnp.float32) * fold).astype(jnp.bfloat16)
        if self.project_out:
            bo = 1.0 / (inner_dim ** 0.5)
            self.w_out = jax.random.uniform(
                k2, (inner_dim, dim), jnp.float32, -bo, bo).astype(jnp.bfloat16)
            self.b_out = jax.random.uniform(k3, (dim,), jnp.float32, -bo, bo)
        # TODO(synk): nn.Dropout(p=0.0) is the identity in this forward pass; omitted.

    def __call__(self, x):
        B, N, D = x.shape
        H, dh = self.heads, self.dim_head
        inner = H * dh

        # QKV projection (no bias), scale pre-folded, bf16 output to halve HBM bytes.
        qkv = linear_pallas(x.reshape(B * N, D), self.w_qkv_scaled,
                            out_dtype=jnp.bfloat16)                  # (B*N, 3*inner)

        # 'b n (h d) -> (b h) n d' for q/k/v (one XLA transpose over bf16 data).
        qkv = qkv.reshape(B, N, 3, H, dh).transpose(2, 0, 3, 1, 4)    # (3, B, H, N, dh)
        q = qkv[0].reshape(B * H, N, dh)
        k = qkv[1].reshape(B * H, N, dh)
        v = qkv[2].reshape(B * H, N, dh)

        # Fused flash attention; kernel writes the merged 'b n (h d)' layout
        # directly (lane-dense stores, no output-side XLA transpose).
        out = flash_attention_pallas(q, k, v, batch=B, heads=H)       # (B, N, inner) bf16
        out = out.reshape(B * N, inner)

        if self.project_out:
            out = linear_pallas(out, self.w_out, self.b_out, out_dtype=jnp.float32)
            return out.reshape(B, N, D)
        return out.astype(jnp.float32).reshape(B, N, inner)


# ----------------------------------------- main -----------------------------------------

if __name__ == "__main__":
    key = jax.random.PRNGKey(0)
    B, N, D = 2, 8, 32          # batch=2, seq=8, hidden=32
    heads, dim_head = 8, 64     # module defaults -> inner_dim = 512

    k_x, k_params = jax.random.split(key)
    x = jax.random.normal(k_x, (B, N, D), dtype=jnp.float32)

    attn = AttentionPallas(D, heads=heads, dim_head=dim_head, key=k_params)
    y = attn(x)
    jax.block_until_ready(y)

    # ----- reference in plain JAX (mirrors the torch forward; bf16 MXU operands
    # like the kernel, f32 accumulation / softmax) -----
    inner = heads * dim_head
    xb = x.astype(jnp.bfloat16)
    qkv_ref = jnp.dot(xb, attn.w_qkv,
                      preferred_element_type=jnp.float32).astype(jnp.bfloat16)
    q_r, k_r, v_r = jnp.split(qkv_ref, 3, axis=-1)

    def split_heads(t):
        return t.reshape(B, N, heads, dim_head).transpose(0, 2, 1, 3)

    q_r, k_r, v_r = map(split_heads, (q_r, k_r, v_r))
    dots = jnp.einsum('bhid,bhjd->bhij', q_r, k_r,
                      preferred_element_type=jnp.float32) * attn.scale
    a = jax.nn.softmax(dots, axis=-1)
    out_ref = jnp.einsum('bhij,bhjd->bhid', a.astype(jnp.bfloat16), v_r,
                         preferred_element_type=jnp.float32)
    out_ref = out_ref.transpose(0, 2, 1, 3).reshape(B * N, inner).astype(jnp.bfloat16)
    ref = (jnp.dot(out_ref, attn.w_out, preferred_element_type=jnp.float32)
           + attn.b_out).reshape(B, N, D)

    assert y.shape == ref.shape, (y.shape, ref.shape)
    max_err = jnp.max(jnp.abs(y - ref))
    # bf16 operands + approx reciprocal + tiled accumulation order -> loose-ish tol.
    assert jnp.allclose(y, ref, atol=2e-2, rtol=2e-2), f"mismatch, max abs err={max_err}"

    print("KERNEL_OK")
</pallas_src>

<mosaic_0001>
module attributes {stable_mosaic.version = 11 : i64} {
  func.func @_linear_kernel(%arg0: i32, %arg1: memref<16x32xf32, #tpu.memory_space<vmem>>, %arg2: memref<32x1536xbf16, #tpu.memory_space<vmem>>, %arg3: memref<16x1536xbf16, #tpu.memory_space<vmem>>) attributes {dimension_semantics = [#tpu.dimension_semantics<parallel>], iteration_bounds = array<i64: 1>, scalar_prefetch = 0 : i64, scratch_operands = 0 : i64, tpu.core_type = #tpu.core_type<tc>, window_params = [{transform_indices = @transform_0, window_bounds = array<i64: 16, 32>}, {pipeline_mode = #tpu.pipeline_mode<synchronous>, transform_indices = @transform_1, window_bounds = array<i64: 32, 1536>}, {transform_indices = @transform_2, window_bounds = array<i64: 16, 1536>}]} {
    %c0 = arith.constant 0 : index
    %c0_0 = arith.constant 0 : index
    %0 = vector.load %arg1[%c0, %c0_0] : memref<16x32xf32, #tpu.memory_space<vmem>>, vector<16x32xf32>
    %1 = arith.truncf %0 : vector<16x32xf32> to vector<16x32xbf16>
    %c0_1 = arith.constant 0 : index
    %c0_2 = arith.constant 0 : index
    %2 = vector.load %arg2[%c0_1, %c0_2] : memref<32x1536xbf16, #tpu.memory_space<vmem>>, vector<32x1536xbf16>
    %cst = arith.constant dense<0.000000e+00> : vector<16x1536xf32>
    %3 = tpu.matmul %1, %2, %cst {dimension_numbers = #tpu.dot_dimension_numbers<[1], [0], [0], [1], [0, 0, 1, 1], [], []>} : vector<16x32xbf16>, vector<32x1536xbf16>, vector<16x1536xf32> -> vector<16x1536xf32>
    %4 = arith.truncf %3 : vector<16x1536xf32> to vector<16x1536xbf16>
    %c0_3 = arith.constant 0 : index
    %c0_4 = arith.constant 0 : index
    %5 = vector.load %arg3[%c0_3, %c0_4] : memref<16x1536xbf16, #tpu.memory_space<vmem>>, vector<16x1536xbf16>
    tpu.vector_store %arg3[%c0_3, %c0_4], %4 {strides = array<i32>} : memref<16x1536xbf16, #tpu.memory_space<vmem>>, vector<16x1536xbf16>,
    return
  }
  func.func @transform_0(%arg0: i32) -> (i32, i32) {
    %c0_i32 = arith.constant 0 : i32
    %c0_i32_0 = arith.constant 0 : i32
    return %arg0, %c0_i32 : i32, i32
  }
  func.func @transform_1(%arg0: i32) -> (i32, i32) {
    %c0_i32 = arith.constant 0 : i32
    %c0_i32_0 = arith.constant 0 : i32
    %c0_i32_1 = arith.constant 0 : i32
    return %c0_i32, %c0_i32_0 : i32, i32
  }
  func.func @transform_2(%arg0: i32) -> (i32, i32) {
    %c0_i32 = arith.constant 0 : i32
    %c0_i32_0 = arith.constant 0 : i32
    return %arg0, %c0_i32 : i32, i32
  }
}

</mosaic_0001>

<bundles_post_ra>
// kernel: tpu_custom_call.1
= control target key start
LH: loop header
LB: loop body
LE: loop exit
PB: predicated region body
PF: predicated region fallthrough
CT: control target
= control target key end

     0   :  { %7 = vsyncpa [#allocation3], 0  ;;  %s760_s0 = inlined_call_operand.hbm [shape: f32[16,32], index: 0, kind: input, shape index: {}]   ;;  %s761_s1 = inlined_call_operand.hbm [shape: bf16[32,1536], index: 1, kind: input, shape index: {}]   ;;  %s762_s2 = inlined_call_operand.hbm [shape: bf16[16,1536], index: 2, kind: output, shape index: {}]  }
   0x1   :  { %8 = vsyncpa [#allocation6], 0 }
   0x2   :  { %9 = vsyncpa [#allocation4], 0  ;;  %s716_s9 = smov [#allocation2]  }
   0x3   :  { %s15_s10 = sshll.u32 %s716_s9, 4  ;;  %s16_s10 = int_to_ptr.vmem [resolvable:$true] %s15_s10 }
   0x4   :  { %s658_s11 = scalar_lea.vmem %s16_s10, 256  ;;  %p663_p1 = scmp.lt.s32.totalorder %s16_s10, %s16_s10 }
   0x5   :  { %p659_p0 = scmp.ne.s32.totalorder %s16_s10, %s658_s11  ;;  %p664_p2 = scmp.lt.s32.totalorder %s658_s11, %s658_s11 }
   0x7   :  { %p665_p3 = por %p664_p2, %p663_p1 }
   0x9   :  { %p666_p4 = pnand %p665_p3, %p659_p0 }
   0xb   :  { %669 = shalt.err (!%p666_p4)
}
   0xc   :  { %s717_s12 = smov 128   ;;  %s718_s13 = smov 8  }
   0xd   :  { %21 = dma.hbm_to_vmem [thread:$0]  %s760_s0, 256, %s16_s10, [#allocation3], %s717_s12, %s717_s12, %s718_s13  }
   0xe   :  { %s719_s16 = smov [#allocation5]  }
   0xf   :  { %s27_s17 = sshll.u32 %s719_s16, 4  ;;  %s28_s17 = int_to_ptr.vmem [resolvable:$true] %s27_s17 }
  0x10   :  { %s678_s18 = scalar_lea.vmem %s28_s17, 3072  ;;  %p683_p6 = scmp.lt.s32.totalorder %s28_s17, %s28_s17 }
  0x11   :  { %p679_p5 = scmp.ne.s32.totalorder %s28_s17, %s678_s18  ;;  %p684_p7 = scmp.lt.s32.totalorder %s678_s18, %s678_s18 }
  0x13   :  { %p685_p8 = por %p684_p7, %p683_p6 }
  0x15   :  { %p686_p9 = pnand %p685_p8, %p679_p5 }
  0x17   :  { %689 = shalt.err (!%p686_p9)
}
  0x18   :  { %s720_s19 = smov 768   ;;  %s721_s20 = smov 48  }
  0x19   :  { %33 = dma.hbm_to_vmem [thread:$0]  %s761_s1, 3072, %s28_s17, [#allocation6], %s720_s19, %s720_s19, %s721_s20  }
  0x1a   :  { %710 = dma.done.wait [#allocation3], 256  }
  0x1b   :  { %711 = vsyncadd [#allocation3], 4294967040 }
  0x1c   :  { %712 = dma.done.wait [#allocation6], 3072  }
  0x1d   :  { %713 = vsyncadd [#allocation6], 4294964224  ;;  %v722_v0 = vmov 0   ;;  %v614_v1 = vld [vmem:[#allocation5 + $0x64] ss:$48 sps:$4 sm:$0xff]   ;;  %v42_v10 = vld [vmem:[#allocation2 + $0x8] sm:$0xff] }
  0x1e   :  { %224 = vmatprep.mubr.bf16.mxu0 %v722_v0  ;;  %267 = vmatprep.mubr.bf16.mxu1 %v722_v0  ;;  %v616_v2 = vld [vmem:[#allocation5 + $0x6c] ss:$48 sps:$4 sm:$0xff]   ;;  %v618_v3 = vld [vmem:[#allocation5 + $0x60] ss:$48 sps:$4 sm:$0xff]   ;;  %v619_v4 = vld [vmem:[#allocation5 + $0x68] ss:$48 sps:$4 sm:$0xff]  }
  0x1f   :  { %204 = vmatprep.subr.bf16.mxu0 %v614_v1  ;;  %247 = vmatprep.subr.bf16.mxu1 %v616_v2  ;;  %v620_v5 = vld [vmem:[#allocation5 + $0x4] ss:$48 sps:$4 sm:$0xff]   ;;  %v622_v6 = vld [vmem:[#allocation5 + $0xc] ss:$48 sps:$4 sm:$0xff]   ;;  %v624_v7 = vld [vmem:[#allocation5] ss:$48 sps:$4 sm:$0xff]  }
  0x20   :  { %205 = vmatpush1.bf16.msra.mxu0 %v618_v3  ;;  %248 = vmatpush1.bf16.msra.mxu1 %v619_v4  ;;  %v625_v8 = vld [vmem:[#allocation5 + $0x8] ss:$48 sps:$4 sm:$0xff]   ;;  %v41_v9 = vld [vmem:[#allocation2] sm:$0xff]  ;;  %vm188_vm0 = vcmask 261120   ;;  %v631_v15 = vld [vmem:[#allocation5 + $0x7c] ss:$48 sps:$4 sm:$0xff]  }
  0x21   :  { %206 = vmatprep.subr.bf16.mxu0 %v620_v5  ;;  %249 = vmatprep.subr.bf16.mxu1 %v622_v6  ;;  %v626_v11 = vld [vmem:[#allocation5 + $0x70] ss:$48 sps:$4 sm:$0xff]   ;;  %v43_v12 = vpack.c.bf16 %v42_v10, %v41_v9  ;;  %v628_v13 = vld [vmem:[#allocation5 + $0x74] ss:$48 sps:$4 sm:$0xff]   ;;  %v629_v14 = vld [vmem:[#allocation5 + $0x78] ss:$48 sps:$4 sm:$0xff]  }
  0x22   :  { %v634_v16 = vld [vmem:[#allocation5 + $0x14] ss:$48 sps:$4 sm:$0xff]   ;;  %v637_v17 = vld [vmem:[#allocation5 + $0x1c] ss:$48 sps:$4 sm:$0xff]   ;;  %v632_v18 = vld [vmem:[#allocation5 + $0x10] ss:$48 sps:$4 sm:$0xff]  }
  0x23   :  { %v635_v19 = vld [vmem:[#allocation5 + $0x18] ss:$48 sps:$4 sm:$0xff]   ;;  %v640_v20 = vld [vmem:[#allocation5 + $0x84] ss:$48 sps:$4 sm:$0xff]   ;;  %v643_v21 = vld [vmem:[#allocation5 + $0x8c] ss:$48 sps:$4 sm:$0xff]  }
  0x24   :  { %207 = vmatpush1.bf16.msra.mxu0 %v624_v7  ;;  %250 = vmatpush1.bf16.msra.mxu1 %v625_v8  ;;  %v638_v22 = vld [vmem:[#allocation5 + $0x80] ss:$48 sps:$4 sm:$0xff]   ;;  %v641_v23 = vld [vmem:[#allocation5 + $0x88] ss:$48 sps:$4 sm:$0xff]   ;;  %v646_v24 = vld [vmem:[#allocation5 + $0x24] ss:$48 sps:$4 sm:$0xff]  }
  0x25   :  { %290 = vmatprep.subr.bf16.mxu0 %v628_v13  ;;  %333 = vmatprep.subr.bf16.mxu1 %v631_v15  ;;  %v649_v25 = vld [vmem:[#allocation5 + $0x2c] ss:$48 sps:$4 sm:$0xff]   ;;  %v644_v26 = vld [vmem:[#allocation5 + $0x20] ss:$48 sps:$4 sm:$0xff]   ;;  %v647_v27 = vld [vmem:[#allocation5 + $0x28] ss:$48 sps:$4 sm:$0xff]  }
  0x26   :  { %s723_s0 = smov [#allocation7]  }
  0x27   :  { %576 = vmatmul.mubr.msk.bf16.vlgmr.msra.gmra.mxu0 %vm188_vm0, %v43_v12  ;;  %577 = vmatmul.mubr.msk.bf16.vlgmr.msra.gmra.mxu1 %vm188_vm0, %v43_v12  ;;  %s539_s1 = sshll.u32 %s723_s0, 4  ;;  %s540_s1 = int_to_ptr.vmem [resolvable:$true] %s539_s1 }
  0x28   :  { %291 = vmatpush1.bf16.msra.mxu0 %v626_v11  ;;  %334 = vmatpush1.bf16.msra.mxu1 %v629_v14  ;;  %s690_s23 = scalar_lea.vmem %s540_s1, 1536  ;;  %p695_p11 = scmp.lt.s32.totalorder %s540_s1, %s540_s1 }
  0x29   :  { %292 = vmatprep.subr.bf16.mxu0 %v634_v16  ;;  %335 = vmatprep.subr.bf16.mxu1 %v637_v17  ;;  %p691_p10 = scmp.ne.s32.totalorder %s540_s1, %s690_s23  ;;  %p696_p12 = scmp.lt.s32.totalorder %s690_s23, %s690_s23 }
  0x2a   :  { %310 = vmatprep.mubr.bf16.mxu0 %v722_v0  ;;  %353 = vmatprep.mubr.bf16.mxu1 %v722_v0 }
  0x2b   :  { %p697_p13 = por %p696_p12, %p695_p11 }
  0x2c   :  { %293 = vmatpush1.bf16.msra.mxu0 %v632_v18  ;;  %336 = vmatpush1.bf16.msra.mxu1 %v635_v19 }
  0x2d   :  { %376 = vmatprep.subr.bf16.mxu0 %v640_v20  ;;  %419 = vmatprep.subr.bf16.mxu1 %v643_v21  ;;  %p698_p0 = pnand %p697_p13, %p691_p10 }
  0x2f   :  { %578 = vmatmul.mubr.msk.bf16.vlgmr.msra.gmra.mxu0 %vm188_vm0, %v43_v12  ;;  %579 = vmatmul.mubr.msk.bf16.vlgmr.msra.gmra.mxu1 %vm188_vm0, %v43_v12 }
  0x30   :  { %377 = vmatpush1.bf16.msra.mxu0 %v638_v22  ;;  %420 = vmatpush1.bf16.msra.mxu1 %v641_v23 }
  0x31   :  { %378 = vmatprep.subr.bf16.mxu0 %v646_v24  ;;  %421 = vmatprep.subr.bf16.mxu1 %v649_v25 }
  0x32   :  { %396 = vmatprep.mubr.bf16.mxu0 %v722_v0  ;;  %439 = vmatprep.mubr.bf16.mxu1 %v722_v0 }
  0x34   :  { %379 = vmatpush1.bf16.msra.mxu0 %v644_v26  ;;  %422 = vmatpush1.bf16.msra.mxu1 %v647_v27 }
  0x37   :  { %580 = vmatmul.mubr.msk.bf16.vlgmr.msra.gmra.mxu0 %vm188_vm0, %v43_v12  ;;  %581 = vmatmul.mubr.msk.bf16.vlgmr.msra.gmra.mxu1 %vm188_vm0, %v43_v12 }
  0xe7   :  { %v226_v28 = vpop.f32.mrf.mxu0  ;;  %v269_v29 = vpop.f32.mrf.mxu1 }
  0xe9   :  { %v228_v30 = vpop.f32.mrf.mxu0  ;;  %v271_v31 = vpop.f32.mrf.mxu1 }
  0xea   :  { %v594_v32 = vpack.c.bf16 %v228_v30, %v226_v28  ;;  %v595_v33 = vpack.c.bf16 %v271_v31, %v269_v29 }
  0xeb   :  { %v230_v34 = vpop.f32.mrf.mxu0  ;;  %v273_v35 = vpop.f32.mrf.mxu1 }
  0xec   :  { %522 = vst [vmem:[#allocation7] sm:$0xff] %v594_v32  ;;  %523 = vst [vmem:[#allocation7 + $0x8] sm:$0xff] %v595_v33 }
  0xed   :  { %v232_v36 = vpop.f32.mrf.mxu0  ;;  %v275_v37 = vpop.f32.mrf.mxu1 }
  0xee   :  { %v600_v38 = vpack.c.bf16 %v232_v36, %v230_v34  ;;  %v601_v39 = vpack.c.bf16 %v275_v37, %v273_v35 }
  0xef   :  { %v312_v40 = vpop.f32.mrf.mxu0  ;;  %v355_v41 = vpop.f32.mrf.mxu1 }
  0xf0   :  { %528 = vst [vmem:[#allocation7 + $0x30] sm:$0xff] %v600_v38  ;;  %529 = vst [vmem:[#allocation7 + $0x38] sm:$0xff] %v601_v39 }
  0xf1   :  { %v314_v42 = vpop.f32.mrf.mxu0  ;;  %v357_v43 = vpop.f32.mrf.mxu1 }
  0xf2   :  { %v596_v44 = vpack.c.bf16 %v314_v42, %v312_v40  ;;  %v597_v45 = vpack.c.bf16 %v357_v43, %v355_v41 }
  0xf3   :  { %v316_v46 = vpop.f32.mrf.mxu0  ;;  %v359_v47 = vpop.f32.mrf.mxu1 }
  0xf4   :  { %524 = vst [vmem:[#allocation7 + $0x10] sm:$0xff] %v596_v44  ;;  %525 = vst [vmem:[#allocation7 + $0x18] sm:$0xff] %v597_v45 }
  0xf5   :  { %v318_v48 = vpop.f32.mrf.mxu0  ;;  %v361_v49 = vpop.f32.mrf.mxu1 }
  0xf6   :  { %v602_v50 = vpack.c.bf16 %v318_v48, %v316_v46  ;;  %v603_v51 = vpack.c.bf16 %v361_v49, %v359_v47 }
  0xf7   :  { %v398_v52 = vpop.f32.mrf.mxu0  ;;  %v441_v53 = vpop.f32.mrf.mxu1 }
  0xf8   :  { %530 = vst [vmem:[#allocation7 + $0x40] sm:$0xff] %v602_v50  ;;  %531 = vst [vmem:[#allocation7 + $0x48] sm:$0xff] %v603_v51 }
  0xf9   :  { %v400_v54 = vpop.f32.mrf.mxu0  ;;  %v443_v55 = vpop.f32.mrf.mxu1 }
  0xfa   :  { %v598_v56 = vpack.c.bf16 %v400_v54, %v398_v52  ;;  %v599_v57 = vpack.c.bf16 %v443_v55, %v441_v53 }
  0xfb   :  { %v402_v58 = vpop.f32.mrf.mxu0  ;;  %v445_v59 = vpop.f32.mrf.mxu1 }
  0xfc   :  { %526 = vst [vmem:[#allocation7 + $0x20] sm:$0xff] %v598_v56  ;;  %527 = vst [vmem:[#allocation7 + $0x28] sm:$0xff] %v599_v57 }
  0xfd   :  { %v404_v60 = vpop.f32.mrf.mxu0  ;;  %v447_v61 = vpop.f32.mrf.mxu1 }
  0xfe   :  { %v604_v62 = vpack.c.bf16 %v404_v60, %v402_v58  ;;  %v605_v63 = vpack.c.bf16 %v447_v61, %v445_v59 }
 0x100   :  { %532 = vst [vmem:[#allocation7 + $0x50] sm:$0xff] %v604_v62  ;;  %533 = vst [vmem:[#allocation7 + $0x58] sm:$0xff] %v605_v63 }
 0x101   :  { %701 = shalt.err (!%p698_p0)
}
 0x102   :  { %545 = dma.vmem_to_hbm [thread:$0]  %s540_s1, 1536, %s762_s2, [#allocation4], %s720_s19, %s720_s19, %s721_s20  }
 0x103   :  { %714 = dma.done.wait [#allocation4], 1536  }
 0x104   :  { %715 = vsyncadd [#allocation4], 4294965760 }
 0x105   :  { %549 = vsyncpa [#allocation3], 1 }
 0x106   :  { %550 = vsyncpa [#allocation6], 1 }
 0x107   :  { %551 = vsyncpa [#allocation4], 1 }

</bundles_post_ra>
